<compile_context>
chip_gen: v5e
topology: v5e:2x2
jax: 0.10.0
libtpu: 0.0.40
codegen_flags: <defaults>
</compile_context>

<pallas_src>
import functools
import numpy as np
import jax
import jax.numpy as jnp
from jax.experimental import pallas as pl
from jax.experimental.pallas import tpu as pltpu


# ----------------------------------------------------------------------------
# Positional-encoding table (deterministic, mirrors the PyTorch __init__)
# Note: row pos=0 is all zeros (cos terms at position 0 are 0, not 1) — this
# matches the quoted PyTorch module exactly.
# ----------------------------------------------------------------------------
def make_pos_table(d_model: int, max_len: int) -> np.ndarray:
    pos_table = np.array(
        [[pos / np.power(10000, 2 * i / d_model) for i in range(d_model)]
         if pos != 0 else np.zeros(d_model)
         for pos in range(max_len)]
    )
    pos_table[1:, 0::2] = np.sin(pos_table[1:, 0::2])
    pos_table[1:, 1::2] = np.cos(pos_table[1:, 1::2])
    return pos_table.astype(np.float32)


# ----------------------------------------------------------------------------
# Kernels
# ----------------------------------------------------------------------------
def pe_add_kernel(pos_ref, x_ref, o_ref):
    # eval mode (or p == 0): dropout is identity -> just the broadcast add
    o_ref[...] = x_ref[...] + pos_ref[...]


def pe_add_dropout_kernel(pos_ref, x_ref, bits_ref, o_ref, *,
                          keep_thresh: int, scale: float):
    # training mode: add positional table, then inverted dropout (keep = 1-p).
    # bits_ref holds uniform uint32; keep iff bits < keep_thresh (~(1-p)*2^32).
    y = x_ref[...] + pos_ref[...]
    keep = bits_ref[...] < jnp.uint32(keep_thresh)
    o_ref[...] = jnp.where(keep, y * jnp.asarray(scale, y.dtype),
                           jnp.zeros_like(y))


# ----------------------------------------------------------------------------
# Helpers
# ----------------------------------------------------------------------------
def _pick_row_tile(R: int, C: int, itemsize: int,
                   target_bytes: int = 2 << 20) -> int:
    """Rows per tile: ~target_bytes per block, sublane-aligned, divides R."""
    sublane = max(8, 32 // itemsize)          # 8 for f32, 16 for bf16
    if R * C * itemsize <= target_bytes or R <= sublane:
        return R
    tr = (target_bytes // (C * itemsize)) // sublane * sublane
    tr = max(sublane, min(tr, R))
    while tr > sublane and R % tr != 0:
        tr -= sublane
    if R % tr != 0:
        return R                              # fallback: whole slab
    return tr


# ----------------------------------------------------------------------------
# Wrapper
# ----------------------------------------------------------------------------
def positional_encoding(enc_inputs, pos_table, *, dropout_p=0.1,
                        training=False, seed=0):
    """enc_inputs: [B, S, D]; pos_table: [max_len, D] (same dtype or f32)."""
    B, S, D = enc_inputs.shape
    dtype = enc_inputs.dtype
    pos_slice = pos_table[:S, :].astype(dtype)        # [S, D] (glue, plain JAX)

    # Lane-dense layout: fold (S, D) -> (R, C) with C a multiple of 128 when
    # d_model < 128, so output stores are unmasked vst (not masked vst.msk).
    if D % 128 == 0:
        R, C = S, D
        x2, pos2, reshaped = enc_inputs, pos_slice, False
    elif (S * D) % 128 == 0:
        R, C = (S * D) // 128, 128
        x2 = enc_inputs.reshape(B, R, C)
        pos2 = pos_slice.reshape(R, C)
        reshaped = True
    else:
        # TODO(synk): D < 128 and S*D not a multiple of 128 -> falls back to
        #             masked partial stores (correct, just slower).
        R, C = S, D
        x2, pos2, reshaped = enc_inputs, pos_slice, False

    itemsize = jnp.dtype(dtype).itemsize
    TR = _pick_row_tile(R, C, itemsize)               # ~2 MiB blocks max
    n_s = R // TR

    cparams = pltpu.CompilerParams(
        # both axes independent (no reduction) -> shardable across v7x's 2 TCs
        dimension_semantics=("parallel", "parallel"))

    apply_dropout = training and dropout_p > 0.0

    if not apply_dropout:
        grid_spec = pltpu.PrefetchScalarGridSpec(
            num_scalar_prefetch=0,
            grid=(n_s, B),                            # batch innermost: pos stays resident
            in_specs=[
                pl.BlockSpec((TR, C), lambda s, b: (s, 0)),
                pl.BlockSpec((pl.Squeezed(), TR, C), lambda s, b: (b, s, 0)),
            ],
            out_specs=pl.BlockSpec((pl.Squeezed(), TR, C),
                                   lambda s, b: (b, s, 0)),
        )
        out2 = pl.pallas_call(
            pe_add_kernel,
            out_shape=jax.ShapeDtypeStruct((B, R, C), dtype),
            grid_spec=grid_spec,
            compiler_params=cparams,
        )(pos2, x2)
    else:
        # Uniform uint32 bits generated once in the wrapper (portable across
        # TPU hardware and interpret mode); mask + scale fused in the kernel.
        bits = jax.random.bits(jax.random.PRNGKey(seed), (B, R, C),
                               dtype=jnp.uint32)
        keep_thresh = min(int(round((1.0 - dropout_p) * 4294967296.0)),
                          4294967295)
        kernel = functools.partial(pe_add_dropout_kernel,
                                   keep_thresh=keep_thresh,
                                   scale=1.0 / (1.0 - dropout_p))
        grid_spec = pltpu.PrefetchScalarGridSpec(
            num_scalar_prefetch=0,
            grid=(n_s, B),
            in_specs=[
                pl.BlockSpec((TR, C), lambda s, b: (s, 0)),
                pl.BlockSpec((pl.Squeezed(), TR, C), lambda s, b: (b, s, 0)),
                pl.BlockSpec((pl.Squeezed(), TR, C), lambda s, b: (b, s, 0)),
            ],
            out_specs=pl.BlockSpec((pl.Squeezed(), TR, C),
                                   lambda s, b: (b, s, 0)),
        )
        out2 = pl.pallas_call(
            kernel,
            out_shape=jax.ShapeDtypeStruct((B, R, C), dtype),
            grid_spec=grid_spec,
            compiler_params=cparams,
        )(pos2, x2, bits)

    return out2.reshape(B, S, D) if reshaped else out2


# ----------------------------------------------------------------------------
# Reference (pure JAX) — eval mode (dropout = identity)
# ----------------------------------------------------------------------------
def positional_encoding_ref(enc_inputs, pos_table):
    S = enc_inputs.shape[1]
    return enc_inputs + pos_table[:S, :].astype(enc_inputs.dtype)


if __name__ == "__main__":
    key = jax.random.PRNGKey(0)

    # --- primary small case: [batch=2, seq=8, d_model=32] -------------------
    B, S, D = 2, 8, 32
    MAX_LEN = 64
    x = jax.random.normal(key, (B, S, D), dtype=jnp.float32)
    pos_table = jnp.asarray(make_pos_table(D, MAX_LEN))

    out = positional_encoding(x, pos_table, dropout_p=0.1, training=False)
    out = jax.block_until_ready(out)
    ref = positional_encoding_ref(x, pos_table)
    assert out.shape == (B, S, D)
    assert jnp.allclose(out, ref, atol=1e-6, rtol=1e-6), "eval mismatch (D=32)"

    # --- lane-native case matching the module's d_model=512 -----------------
    B2, S2, D2 = 2, 8, 512
    k2 = jax.random.PRNGKey(1)
    x2 = jax.random.normal(k2, (B2, S2, D2), dtype=jnp.float32)
    pos_table2 = jnp.asarray(make_pos_table(D2, MAX_LEN))
    out2 = jax.block_until_ready(
        positional_encoding(x2, pos_table2, dropout_p=0.1, training=False))
    ref2 = positional_encoding_ref(x2, pos_table2)
    assert jnp.allclose(out2, ref2, atol=1e-6, rtol=1e-6), "eval mismatch (D=512)"

    # --- training mode: runs, elements are 0 or (x+pos)/(1-p) ----------------
    # TODO(synk): dropout mask cannot be bit-matched to torch's RNG.
    out_tr = jax.block_until_ready(
        positional_encoding(x, pos_table, dropout_p=0.1, training=True, seed=7))
    assert out_tr.shape == (B, S, D)
    scaled = ref / (1.0 - 0.1)
    reconstructed = jnp.where(out_tr == 0, scaled, out_tr)
    assert jnp.allclose(reconstructed, scaled, atol=1e-5, rtol=1e-5), \
        "dropout values must be 0 or (x+pos)/(1-p)"
    n_dropped = int(jnp.sum(out_tr == 0))
    assert 0 < n_dropped < out_tr.size, "dropout should drop some but not all"

    print("KERNEL_OK")
</pallas_src>

<mosaic_0001>
module attributes {stable_mosaic.version = 11 : i64} {
  func.func @pe_add_kernel(%arg0: i32, %arg1: i32, %arg2: memref<2x128xf32, #tpu.memory_space<vmem>>, %arg3: memref<1x2x128xf32, #tpu.memory_space<vmem>>, %arg4: memref<1x2x128xf32, #tpu.memory_space<vmem>>) attributes {dimension_semantics = [#tpu.dimension_semantics<parallel>, #tpu.dimension_semantics<parallel>], iteration_bounds = array<i64: 1, 2>, scalar_prefetch = 0 : i64, scratch_operands = 0 : i64, tpu.core_type = #tpu.core_type<tc>, window_params = [{transform_indices = @transform_0, window_bounds = array<i64: 2, 128>}, {transform_indices = @transform_1, window_bounds = array<i64: 1, 2, 128>}, {transform_indices = @transform_2, window_bounds = array<i64: 1, 2, 128>}]} {
    %c0 = arith.constant 0 : index
    %c0_0 = arith.constant 0 : index
    %c0_1 = arith.constant 0 : index
    %0 = vector.load %arg3[%c0, %c0_0, %c0_1] : memref<1x2x128xf32, #tpu.memory_space<vmem>>, vector<1x2x128xf32>
    %1 = vector.shape_cast %0 : vector<1x2x128xf32> to vector<2x128xf32>
    %c0_2 = arith.constant 0 : index
    %c0_3 = arith.constant 0 : index
    %2 = vector.load %arg2[%c0_2, %c0_3] : memref<2x128xf32, #tpu.memory_space<vmem>>, vector<2x128xf32>
    %3 = arith.addf %1, %2 : vector<2x128xf32>
    %c0_4 = arith.constant 0 : index
    %c0_5 = arith.constant 0 : index
    %c0_6 = arith.constant 0 : index
    %4 = vector.load %arg4[%c0_4, %c0_5, %c0_6] : memref<1x2x128xf32, #tpu.memory_space<vmem>>, vector<1x2x128xf32>
    %5 = vector.shape_cast %4 : vector<1x2x128xf32> to vector<2x128xf32>
    %6 = vector.shape_cast %3 : vector<2x128xf32> to vector<1x2x128xf32>
    tpu.vector_store %arg4[%c0_4, %c0_5, %c0_6], %6 {strides = array<i32>} : memref<1x2x128xf32, #tpu.memory_space<vmem>>, vector<1x2x128xf32>,
    return
  }
  func.func @transform_0(%arg0: i32, %arg1: i32) -> (i32, i32) {
    %c0_i32 = arith.constant 0 : i32
    %c0_i32_0 = arith.constant 0 : i32
    return %arg0, %c0_i32 : i32, i32
  }
  func.func @transform_1(%arg0: i32, %arg1: i32) -> (i32, i32, i32) {
    %c0_i32 = arith.constant 0 : i32
    %c0_i32_0 = arith.constant 0 : i32
    return %arg1, %arg0, %c0_i32 : i32, i32, i32
  }
  func.func @transform_2(%arg0: i32, %arg1: i32) -> (i32, i32, i32) {
    %c0_i32 = arith.constant 0 : i32
    %c0_i32_0 = arith.constant 0 : i32
    return %arg1, %arg0, %c0_i32 : i32, i32, i32
  }
}

</mosaic_0001>

<bundles_post_ra>
// kernel: tpu_custom_call.1
= control target key start
LH: loop header
LB: loop body
LE: loop exit
PB: predicated region body
PF: predicated region fallthrough
CT: control target
= control target key end

     0   :  { %7 = vsyncpa [#allocation3], 0  ;;  %s716_s0 = inlined_call_operand.hbm [shape: f32[2,128], index: 0, kind: input, shape index: {}]   ;;  %s717_s1 = inlined_call_operand.hbm [shape: f32[2,2,128], index: 1, kind: input, shape index: {}]   ;;  %s718_s2 = inlined_call_operand.hbm [shape: f32[2,2,128], index: 2, kind: output, shape index: {}]  }
   0x1   :  { %8 = vsyncpa [#allocation6], 0 }
   0x2   :  { %10 = vsyncpa [#allocation6 + $0x1], 0 }
   0x3   :  { %11 = vsyncpa [#allocation4], 0 }
   0x4   :  { %13 = vsyncpa [#allocation4 + $0x1], 0  ;;  %s567_s9 = smov 0   ;;  %s569_s10 = smov 0  }
   0x5   :  { %s571_s11 = smov 0   ;;  %s573_s12 = smov 0  }
   0x6   :  { %s575_s13 = smov 0   ;;  %s577_s14 = smov 0  }
   0x7 LB: > { %s315_s15 = sadd.s32 4294967295, %s549_s14   ;;  %s316_s16 = sadd.s32 4294967294, %s549_s14   ;;  %s549_s14 = sphi %s577_s14, %s19_s14   ;;  %s545_s13 = sphi %s575_s13, %s730_s13   ;;  %s541_s12 = sphi %s573_s12, %s729_s12   ;;  %s537_s11 = sphi %s571_s11, %s728_s11   ;;  %s533_s10 = sphi %s569_s10, %s727_s10   ;;  %s529_s9 = sphi %s567_s9, %s726_s9  }
   0x8   : > { %p79_p0 = scmp.ne.s32.totalorder %s533_s10, %s529_s9  ;;  %p601_p1 = scmp.eq.s32.totalorder %s315_s15, 0 }
   0x9   : > { %p605_p2 = scmp.eq.s32.totalorder %s315_s15, 1  ;;  %p111_p3 = scmp.eq.s32.totalorder %s316_s16, 1 }
   0xa   : > { %p611_p4 = por %p601_p1, %p79_p0  ;;  %p317_p5 = scmp.ge.s32.totalorder %s549_s14, 1 }
   0xb   : > { %p616_p6 = por %p111_p3, %p79_p0  ;;  %p118_p7 = scmp.lt.s32.totalorder %s549_s14, 3 }
   0xc   : > { %s132_s23 = sshll.u32 %s716_s0, 4  ;;  %p319_p9 = scmp.ge.s32.totalorder %s549_s14, 2  ;;  %s133_s23 = int_to_ptr.hbm [resolvable:$true] %s132_s23 }
   0xd   : > { %p624_p8 = pnand %p317_p5, %p118_p7  ;;  %s551_s25 = smov [#allocation2]  }
   0xe   : > { %s134_s26 = sshll.u32 %s551_s25, 4  ;;  %s28_s27 = sadd.s32 1, %s545_s13  ;;  %s135_s26 = int_to_ptr.vmem [resolvable:$true] %s134_s26 }
   0xf   : > { %p338_p10 = pneg %p624_p8  ;;  %p29_p12 = scmp.ge.s32.totalorder %s28_s27, 2 }
  0x10   : > { %s66_s28 = sadd.s32 1, %s537_s11  ;;  %p73_p13 = scmp.ne.s32.totalorder %s537_s11, %s533_s10 }
  0x11   : > { %p339_p11 = pnand %p338_p10, %p601_p1  ;;  %p74_p0 = scmp.eq.s32.totalorder %s549_s14, 0 }
  0x12   : > { %s732_s27 = smov (%p29_p12, %s28_s27), 0  ;;  %p646_p5 = por %p605_p2, %p73_p13 }
  0x13   : > { %341 = dma.hbm_to_vmem [thread:$0]  (!%p339_p11), %s133_s23, 32, %s135_s26, [#allocation3]  }
  0x14   : > { %p640_p3 = por %p74_p0, %p73_p13  ;;  %s61_s3 = ssub.s32 %s545_s13, %s732_s27 }
  0x15   : > { %p351_p7 = scmp.lt.s32.totalorder %s549_s14, 2  ;;  %p64_p10 = scmp.eq.s32.totalorder %s61_s3, 0 }
  0x16   : > { %s145_s4 = sand.u32 1, %s537_s11   ;;  %s321_s7 = sshll.u32 %s545_s13, 1 }
  0x17   : > { %s320_s5 = sshll.u32 %s145_s4, 1  ;;  %s154_s16 = scalar_lea.hbm %s717_s1, %s321_s7 }
  0x18   : > { %s655_s6 = scalar_select %p64_p10, %s537_s11, %s66_s28  }
  0x19   : > { %s149_s21 = scalar_lea.vmem [#allocation5], %s320_s5  ;;  %s156_s18 = sshll.u32 %s154_s16, 4  ;;  %s157_s18 = int_to_ptr.hbm [resolvable:$true] %s156_s18 }
  0x1a   : > { %s158_s22 = sshll.u32 %s149_s21, 4  ;;  %p343_p2 = pnand %p351_p7, %p640_p3  ;;  %s159_s22 = int_to_ptr.vmem [resolvable:$true] %s158_s22 }
  0x1b   : > { %s146_s23 = scalar_lea.sflag [#allocation6], %s145_s4  ;;  %167 = sbr.rel (%p624_p8) target bundleno = 52 (0x34), region = 28 }
  0x1c   : > { %345 = dma.hbm_to_vmem [thread:$0]  (!%p343_p2), %s157_s18, 32, %s159_s22, %s146_s23  }
  0x20   : > { %516 = dma.done.wait (%p601_p1), [#allocation3], 32  }
  0x21   : > { %518 = vsyncadd (%p601_p1), [#allocation3], 4294967264  ;;  %s670_s25 = sand.u32 1, %s533_s10  }
  0x22   : > { %s324_s26 = sshll.u32 %s670_s25, 1  ;;  %s175_s28 = scalar_lea.sflag [#allocation6], %s670_s25 }
  0x23   : > { %s178_s29 = scalar_lea.vmem [#allocation5], %s324_s26 }
  0x24   : > { %520 = dma.done.wait (%p611_p4), %s175_s28, 32  }
  0x25   : > { %522 = vsyncadd (%p611_p4), %s175_s28, 4294967264  ;;  %s327_s24 = sshll.u32 %s541_s12, 1  ;;  %s199_s5 = scalar_lea.vmem [#allocation7], %s324_s26  ;;  %v200_v0 = vld [vmem:[%s178_s29] sm:$0x3] }
  0x26   : > { %s216_s4 = scalar_lea.hbm %s718_s2, %s327_s24  ;;  %s218_s7 = sshll.u32 %s199_s5, 4  ;;  %v201_v1 = vld [vmem:[#allocation2] sm:$0x3]  ;;  %s219_s7 = int_to_ptr.vmem [resolvable:$true] %s218_s7 }
  0x27   : > { %s220_s8 = sshll.u32 %s216_s4, 4  ;;  %v202_v2 = vadd.f32 %v201_v1, %v200_v0  ;;  %s205_s15 = scalar_lea.sflag [#allocation4], %s670_s25  ;;  %s221_s8 = int_to_ptr.hbm [resolvable:$true] %s220_s8 }
  0x28   : > { %s477_s19 = sshra.s32 %s221_s8, 4  ;;  %s483_s22 = scalar_lea.hbm %s718_s2, 4  ;;  %s478_s19 = int_to_ptr.hbm [resolvable:$true] %s477_s19 }
  0x29   : > { %203 = vst [vmem:[%s199_s5] sm:$0x3] %v202_v2  ;;  %s479_s16 = scalar_lea.hbm %s478_s19, 2  ;;  %p484_p11 = scmp.lt.s32.totalorder %s478_s19, %s718_s2 }
  0x2a   : > { %p480_p1 = scmp.ne.s32.totalorder %s478_s19, %s479_s16  ;;  %p485_p12 = scmp.lt.s32.totalorder %s483_s22, %s479_s16 }
  0x2c   : > { %p481_p4 = pnand %p480_p1, %p646_p5  ;;  %p486_p13 = por %p485_p12, %p484_p11 }
  0x2e   : > { %p482_p8 = pneg %p481_p4 }
  0x30   : > { %p487_p0 = pnand %p486_p13, %p482_p8 }
  0x32   : > { %490 = shalt.err (!%p487_p0)
}
  0x33   : > { %336 = dma.vmem_to_hbm [thread:$0]  (%p646_p5), %s219_s7, 32, %s221_s8, %s205_s15  }
  0x34 PF: > { %s232_s25 = sand.u32 1, %s529_s9   ;;  %p347_p3 = pnand %p319_p9, %p616_p6 }
  0x35   : > { %s233_s26 = scalar_lea.sflag [#allocation4], %s232_s25 }
  0x36   : > { %p348_p7 = pneg %p347_p3 }
  0x38   : > { %524 = dma.done.wait (%p348_p7), %s233_s26, 32  }
  0x39   : > { %526 = vsyncadd (%p348_p7), %s233_s26, 4294967264  ;;  %s19_s14 = sadd.s32 1, %s549_s14   ;;  %s726_s9 = smov %s533_s10 }
  0x3a   : > { %p16_p10 = scmp.ge.s32.totalorder %s19_s14, 4   ;;  %s727_s10 = smov %s537_s11 }
  0x3b   : > { %s728_s11 = smov %s655_s6  ;;  %s729_s12 = smov %s545_s13 }
  0x3c   : > { %s730_s13 = smov %s732_s27  ;;  %18 = sbr.rel (!%p16_p10) target bundleno = 7 (0x7), region = 79 }
  0x41   :  { %239 = vsyncpa [#allocation3], 1 }
  0x42   :  { %241 = vsyncpa [#allocation3 + $0x1], 1 }
  0x43   :  { %242 = vsyncpa [#allocation6], 1 }
  0x44   :  { %244 = vsyncpa [#allocation6 + $0x1], 1 }
  0x45   :  { %245 = vsyncpa [#allocation4], 1 }
  0x46   :  { %247 = vsyncpa [#allocation4 + $0x1], 1 }

</bundles_post_ra>
